<compile_context>
chip_gen: v6e
topology: v6e:2x2x1
jax: 0.10.0
libtpu: 0.0.40
codegen_flags: <defaults>
</compile_context>

<pallas_src>
import functools

import jax
import jax.numpy as jnp
from jax import lax
from jax.experimental import pallas as pl
from jax.experimental.pallas import tpu as pltpu


def _round_up(x: int, m: int) -> int:
    return ((x + m - 1) // m) * m


def _default_tile_b(batch: int) -> int:
    """Lane-aligned batch tile: 4096 by default, but keep >=4 (or >=2) grid steps."""
    b128 = _round_up(batch, 128)
    tile = min(4096, b128)
    if b128 >= 4 * 128 and b128 // tile < 4:
        tile = _round_up(pl.cdiv(b128, 4), 128)
    elif b128 >= 2 * 128 and b128 // tile < 2:
        tile = _round_up(pl.cdiv(b128, 2), 128)
    return tile


def _value_fn_kernel(x_ref, w1_ref, b1_ref, w2_ref, b2_ref, w3_ref, b3_ref, o_ref):
    """Fused 3-layer MLP on one batch tile (transposed compute: batch on lanes).

    x_ref : (TILE_B, state_dim)  VMEM f32  (natural layout, no host transpose)
    w1_ref: (hidden, state_dim)  VMEM bf16 (PyTorch [out, in] layout)
    b1_ref: (hidden, 1)          VMEM f32
    w2_ref: (hidden, hidden)     VMEM bf16
    b2_ref: (hidden, 1)          VMEM f32
    w3_ref: (hidden, 1)          VMEM f32  (fc3 weight as a column, used on VPU)
    b3_ref: (1, 1)               SMEM f32  (scalar)
    o_ref : (1, TILE_B)          VMEM f32  (lane-dense output row)
    """
    x_bf = x_ref[...].astype(jnp.bfloat16)                     # (TB, S)

    # fc1 + ReLU:  h1^T = w1 @ x^T  -> (hidden, TB).  Contract on the last dim of
    # both operands (same structure as q @ k^T), so no explicit transpose of x.
    h1 = lax.dot_general(
        w1_ref[...], x_bf,
        dimension_numbers=(((1,), (1,)), ((), ())),
        preferred_element_type=jnp.float32,
    ) + b1_ref[...]
    h1 = jnp.maximum(h1, 0.0)                                  # (H, TB) f32

    # fc2 + ReLU on the MXU: (hidden, hidden) @ (hidden, TB) -> (hidden, TB).
    h2 = jnp.dot(w2_ref[...], h1.astype(jnp.bfloat16),
                 preferred_element_type=jnp.float32) + b2_ref[...]
    h2 = jnp.maximum(h2, 0.0)                                  # (H, TB) f32

    # fc3 (M = 1) off the MXU: lane-broadcast multiply (VPU) + sublane reduction
    # (XLU), all in f32; the result row stays lane-dense.
    out = jnp.sum(h2 * w3_ref[...], axis=0, keepdims=True) + b3_ref[0, 0]
    o_ref[...] = out.astype(o_ref.dtype)                       # (1, TB)


@functools.partial(jax.jit, static_argnames=("tile_b", "lane_major_output"))
def value_function_forward(state, params, *, tile_b=None, lane_major_output=False):
    """ValueFunction forward pass via one fused Pallas kernel.

    state : (B, state_dim) float32
    params: dict with PyTorch-layout weights:
            w1 (H, state_dim), b1 (H,), w2 (H, H), b2 (H,), w3 (1, H), b3 (1,)

    Returns (B, 1) float32 (module semantics).  With `lane_major_output=True`
    the raw lane-dense (1, Bp) kernel output is returned instead (Bp >= B; the
    padded tail is garbage -- slice [:, :B] before any reduction).
    """
    B, state_dim = state.shape
    hidden = params["w1"].shape[0]

    if tile_b is None:
        tile_b = _default_tile_b(B)
    grid_b = pl.cdiv(B, tile_b)
    Bp = grid_b * tile_b

    # Natural-layout input; pad the batch only when it is not tile-aligned.
    x = state
    if Bp != B:
        x = jnp.pad(x, ((0, Bp - B), (0, 0)))

    # Weights are tiny -- casting / reshaping them host-side is negligible.
    w1 = params["w1"].astype(jnp.bfloat16)                       # (H, S)
    w2 = params["w2"].astype(jnp.bfloat16)                       # (H, H)
    b1 = params["b1"].reshape(hidden, 1).astype(jnp.float32)     # (H, 1)
    b2 = params["b2"].reshape(hidden, 1).astype(jnp.float32)     # (H, 1)
    w3c = params["w3"].reshape(hidden, 1).astype(jnp.float32)    # (H, 1) f32 (VPU fc3)
    b3 = params["b3"].reshape(1, 1).astype(jnp.float32)          # (1, 1) -> SMEM scalar

    full = lambda shape: pl.BlockSpec(shape, lambda i: (0, 0))

    outT = pl.pallas_call(
        _value_fn_kernel,
        out_shape=jax.ShapeDtypeStruct((1, Bp), jnp.float32),
        grid=(grid_b,),
        in_specs=[
            pl.BlockSpec((tile_b, state_dim), lambda i: (i, 0)),   # x batch tile
            full((hidden, state_dim)),                             # w1
            full((hidden, 1)),                                     # b1
            full((hidden, hidden)),                                # w2
            full((hidden, 1)),                                     # b2
            full((hidden, 1)),                                     # w3 column (f32)
            pl.BlockSpec(memory_space=pltpu.MemorySpace.SMEM),     # b3 scalar
        ],
        out_specs=pl.BlockSpec((1, tile_b), lambda i: (0, i)),
        compiler_params=pltpu.CompilerParams(
            dimension_semantics=("parallel",),
        ),
    )(x, w1, b1, w2, b2, w3c, b3)

    if lane_major_output:
        return outT                      # (1, Bp) lane-dense, padded tail is garbage
    # Module semantics: (B, 1).  This reslice is a small (4 B / row) pass; a
    # downstream consumer can take the lane-dense output above to skip it.
    return outT[0, :B].reshape(B, 1)


def init_params(key, state_dim, hidden_dim):
    """Deterministic init matching PyTorch nn.Linear shapes ([out, in]) and fan-in bounds."""
    k1, k2, k3, k4, k5, k6 = jax.random.split(key, 6)

    def uniform(k, shape, fan_in):
        bound = 1.0 / jnp.sqrt(fan_in)
        return jax.random.uniform(k, shape, jnp.float32, -bound, bound)

    return {
        "w1": uniform(k1, (hidden_dim, state_dim), state_dim),
        "b1": uniform(k2, (hidden_dim,), state_dim),
        "w2": uniform(k3, (hidden_dim, hidden_dim), hidden_dim),
        "b2": uniform(k4, (hidden_dim,), hidden_dim),
        "w3": uniform(k5, (1, hidden_dim), hidden_dim),
        "b3": uniform(k6, (1,), hidden_dim),
    }


def _reference(state, params):
    """Plain-JAX f32 reference of the PyTorch forward (nn.Linear: y = x @ W.T + b)."""
    h1 = jnp.maximum(state @ params["w1"].T + params["b1"], 0.0)
    h2 = jnp.maximum(h1 @ params["w2"].T + params["b2"], 0.0)
    return h2 @ params["w3"].T + params["b3"]


if __name__ == "__main__":
    state_dim = 4
    hidden_dim = 32
    batch = 256  # -> tile_b=128, grid of 2 "parallel" steps (both v7x TensorCores busy)

    key = jax.random.PRNGKey(0)
    pkey, xkey = jax.random.split(key)
    params = init_params(pkey, state_dim, hidden_dim)
    state = jax.random.normal(xkey, (batch, state_dim), jnp.float32)

    out = value_function_forward(state, params)
    out = jax.block_until_ready(out)

    ref = _reference(state, params)
    assert out.shape == (batch, 1), out.shape
    # bf16 MXU operands (fc1/fc2) with f32 accumulation and an f32 fc3 head.
    assert jnp.allclose(out, ref, atol=5e-2, rtol=5e-2), "mismatch vs reference"

    print("KERNEL_OK")
</pallas_src>

<mosaic_0001>
module attributes {stable_mosaic.version = 11 : i64} {
  func.func @_value_fn_kernel(%arg0: i32, %arg1: memref<128x4xf32, #tpu.memory_space<vmem>>, %arg2: memref<32x4xbf16, #tpu.memory_space<vmem>>, %arg3: memref<32x1xf32, #tpu.memory_space<vmem>>, %arg4: memref<32x32xbf16, #tpu.memory_space<vmem>>, %arg5: memref<32x1xf32, #tpu.memory_space<vmem>>, %arg6: memref<32x1xf32, #tpu.memory_space<vmem>>, %arg7: memref<1x1xf32, #tpu.memory_space<smem>>, %arg8: memref<1x128xf32, #tpu.memory_space<vmem>>) attributes {dimension_semantics = [#tpu.dimension_semantics<parallel>], iteration_bounds = array<i64: 2>, scalar_prefetch = 0 : i64, scratch_operands = 0 : i64, tpu.core_type = #tpu.core_type<tc>, window_params = [{transform_indices = @transform_0, window_bounds = array<i64: 128, 4>}, {pipeline_mode = #tpu.pipeline_mode<synchronous>, transform_indices = @transform_1, window_bounds = array<i64: 32, 4>}, {pipeline_mode = #tpu.pipeline_mode<synchronous>, transform_indices = @transform_2, window_bounds = array<i64: 32, 1>}, {pipeline_mode = #tpu.pipeline_mode<synchronous>, transform_indices = @transform_3, window_bounds = array<i64: 32, 32>}, {pipeline_mode = #tpu.pipeline_mode<synchronous>, transform_indices = @transform_4, window_bounds = array<i64: 32, 1>}, {pipeline_mode = #tpu.pipeline_mode<synchronous>, transform_indices = @transform_5, window_bounds = array<i64: 32, 1>}, {transform_indices = @transform_6, window_bounds = array<i64: 1, 1>}, {transform_indices = @transform_7, window_bounds = array<i64: 1, 128>}]} {
    %c0 = arith.constant 0 : index
    %c0_0 = arith.constant 0 : index
    %0 = vector.load %arg1[%c0, %c0_0] : memref<128x4xf32, #tpu.memory_space<vmem>>, vector<128x4xf32>
    %1 = arith.truncf %0 : vector<128x4xf32> to vector<128x4xbf16>
    %c0_1 = arith.constant 0 : index
    %c0_2 = arith.constant 0 : index
    %2 = vector.load %arg2[%c0_1, %c0_2] : memref<32x4xbf16, #tpu.memory_space<vmem>>, vector<32x4xbf16>
    %cst = arith.constant dense<0.000000e+00> : vector<32x128xf32>
    %3 = tpu.matmul %2, %1, %cst {dimension_numbers = #tpu.dot_dimension_numbers<[1], [1], [0], [0], [0, 0, 1, 0], [], []>} : vector<32x4xbf16>, vector<128x4xbf16>, vector<32x128xf32> -> vector<32x128xf32>
    %c0_3 = arith.constant 0 : index
    %c0_4 = arith.constant 0 : index
    %4 = vector.load %arg3[%c0_3, %c0_4] : memref<32x1xf32, #tpu.memory_space<vmem>>, vector<32x1xf32>
    %5 = vector.broadcast %4 : vector<32x1xf32> to vector<32x128xf32>
    %6 = arith.addf %3, %5 : vector<32x128xf32>
    %cst_5 = arith.constant 0.000000e+00 : f32
    %7 = vector.broadcast %cst_5 : f32 to vector<32x128xf32>
    %8 = arith.maximumf %6, %7 : vector<32x128xf32>
    %c0_6 = arith.constant 0 : index
    %c0_7 = arith.constant 0 : index
    %9 = vector.load %arg4[%c0_6, %c0_7] : memref<32x32xbf16, #tpu.memory_space<vmem>>, vector<32x32xbf16>
    %10 = arith.truncf %8 : vector<32x128xf32> to vector<32x128xbf16>
    %cst_8 = arith.constant dense<0.000000e+00> : vector<32x128xf32>
    %11 = tpu.matmul %9, %10, %cst_8 {dimension_numbers = #tpu.dot_dimension_numbers<[1], [0], [0], [1], [0, 0, 1, 1], [], []>} : vector<32x32xbf16>, vector<32x128xbf16>, vector<32x128xf32> -> vector<32x128xf32>
    %c0_9 = arith.constant 0 : index
    %c0_10 = arith.constant 0 : index
    %12 = vector.load %arg5[%c0_9, %c0_10] : memref<32x1xf32, #tpu.memory_space<vmem>>, vector<32x1xf32>
    %13 = vector.broadcast %12 : vector<32x1xf32> to vector<32x128xf32>
    %14 = arith.addf %11, %13 : vector<32x128xf32>
    %cst_11 = arith.constant 0.000000e+00 : f32
    %15 = vector.broadcast %cst_11 : f32 to vector<32x128xf32>
    %16 = arith.maximumf %14, %15 : vector<32x128xf32>
    %c0_12 = arith.constant 0 : index
    %c0_13 = arith.constant 0 : index
    %17 = vector.load %arg6[%c0_12, %c0_13] : memref<32x1xf32, #tpu.memory_space<vmem>>, vector<32x1xf32>
    %18 = vector.broadcast %17 : vector<32x1xf32> to vector<32x128xf32>
    %19 = arith.mulf %16, %18 : vector<32x128xf32>
    %cst_14 = arith.constant dense<0.000000e+00> : vector<128xf32>
    %20 = vector.multi_reduction <add>, %19, %cst_14 [0] : vector<32x128xf32> to vector<128xf32>
    %21 = vector.shape_cast %20 : vector<128xf32> to vector<1x128xf32>
    %c0_15 = arith.constant 0 : index
    %c0_16 = arith.constant 0 : index
    %22 = memref.load %arg7[%c0_15, %c0_16] : memref<1x1xf32, #tpu.memory_space<smem>>
    %23 = vector.broadcast %22 : f32 to vector<1x128xf32>
    %24 = arith.addf %21, %23 : vector<1x128xf32>
    %c0_17 = arith.constant 0 : index
    %c0_18 = arith.constant 0 : index
    %25 = vector.load %arg8[%c0_17, %c0_18] : memref<1x128xf32, #tpu.memory_space<vmem>>, vector<1x128xf32>
    tpu.vector_store %arg8[%c0_17, %c0_18], %24 {strides = array<i32>} : memref<1x128xf32, #tpu.memory_space<vmem>>, vector<1x128xf32>,
    return
  }
  func.func @transform_0(%arg0: i32) -> (i32, i32) {
    %c0_i32 = arith.constant 0 : i32
    %c0_i32_0 = arith.constant 0 : i32
    return %arg0, %c0_i32 : i32, i32
  }
  func.func @transform_1(%arg0: i32) -> (i32, i32) {
    %c0_i32 = arith.constant 0 : i32
    %c0_i32_0 = arith.constant 0 : i32
    %c0_i32_1 = arith.constant 0 : i32
    return %c0_i32, %c0_i32_0 : i32, i32
  }
  func.func @transform_2(%arg0: i32) -> (i32, i32) {
    %c0_i32 = arith.constant 0 : i32
    %c0_i32_0 = arith.constant 0 : i32
    %c0_i32_1 = arith.constant 0 : i32
    return %c0_i32, %c0_i32_0 : i32, i32
  }
  func.func @transform_3(%arg0: i32) -> (i32, i32) {
    %c0_i32 = arith.constant 0 : i32
    %c0_i32_0 = arith.constant 0 : i32
    %c0_i32_1 = arith.constant 0 : i32
    return %c0_i32, %c0_i32_0 : i32, i32
  }
  func.func @transform_4(%arg0: i32) -> (i32, i32) {
    %c0_i32 = arith.constant 0 : i32
    %c0_i32_0 = arith.constant 0 : i32
    %c0_i32_1 = arith.constant 0 : i32
    return %c0_i32, %c0_i32_0 : i32, i32
  }
  func.func @transform_5(%arg0: i32) -> (i32, i32) {
    %c0_i32 = arith.constant 0 : i32
    %c0_i32_0 = arith.constant 0 : i32
    %c0_i32_1 = arith.constant 0 : i32
    return %c0_i32, %c0_i32_0 : i32, i32
  }
  func.func @transform_6(%arg0: i32) -> (i32, i32) {
    %c0_i32 = arith.constant 0 : i32
    %c0_i32_0 = arith.constant 0 : i32
    %c0_i32_1 = arith.constant 0 : i32
    return %c0_i32, %c0_i32_0 : i32, i32
  }
  func.func @transform_7(%arg0: i32) -> (i32, i32) {
    %c0_i32 = arith.constant 0 : i32
    %c0_i32_0 = arith.constant 0 : i32
    return %c0_i32, %arg0 : i32, i32
  }
}

</mosaic_0001>

<bundles_post_ra>
// kernel: value_function_forward.1
= control target key start
LH: loop header
LB: loop body
LE: loop exit
PB: predicated region body
PF: predicated region fallthrough
CT: control target
= control target key end

     0   :  { %s1027_s0 = inlined_call_operand.vmem [shape: f32[256,4], index: 0, kind: input, shape index: {}]   ;;  %s1028_s1 = inlined_call_operand.vmem [shape: bf16[32,4], index: 1, kind: input, shape index: {}]   ;;  %s1029_s2 = inlined_call_operand.vmem [shape: f32[32,1], index: 2, kind: input, shape index: {}]   ;;  %s1030_s3 = inlined_call_operand.vmem [shape: bf16[32,32], index: 3, kind: input, shape index: {}]   ;;  %s1031_s4 = inlined_call_operand.vmem [shape: f32[32,1], index: 4, kind: input, shape index: {}]   ;;  %s1032_s5 = inlined_call_operand.vmem [shape: f32[32,1], index: 5, kind: input, shape index: {}]   ;;  %s1033_s6 = inlined_call_operand.<no memory space> [shape: f32[1,1], index: 6, kind: input, shape index: {}]   ;;  %s1034_s7 = inlined_call_operand.hbm [shape: f32[1,256], index: 7, kind: output, shape index: {}]  }
   0x1   :  { %12 = sst [smem:[#allocation2]] %s1033_s6 }
   0x2   :  { %13 = vsyncpa [#allocation4], 0 }
   0x3   :  { %15 = vsyncpa [#allocation4 + $0x1], 0  ;;  %s855_s26 = smov 0   ;;  %s857_s27 = smov 0  }
   0x4   :  { %s859_s28 = smov 0   ;;  %s861_s29 = smov 0  }
   0x5 LB: > { %s634_s6 = sadd.s32 4294967295, %s808_s29   ;;  %s635_s30 = sadd.s32 4294967294, %s808_s29   ;;  %s808_s29 = sphi %s861_s29, %s1040_s29   ;;  %s804_s28 = sphi %s859_s28, %s1039_s28   ;;  %s800_s27 = sphi %s857_s27, %s1038_s27   ;;  %s796_s26 = sphi %s855_s26, %s1037_s26  }
   0x6   : > { %s878_s8 = sadd.s32 1, %s808_s29   ;;  %s180_s9 = sadd.s32 1, %s804_s28 }
   0x7   : > { %s177_s10 = ssub.s32 %s808_s29, %s878_s8  ;;  %p190_p0 = scmp.ne.s32.totalorder %s804_s28, %s800_s27 }
   0x8   : > { %p178_p1 = scmp.eq.s32.totalorder %s177_s10, 0  ;;  %p191_p2 = scmp.eq.s32.totalorder %s634_s6, 1 }
   0x9   : > { %p196_p3 = scmp.ne.s32.totalorder %s800_s27, %s796_s26  ;;  %p197_p4 = scmp.eq.s32.totalorder %s635_s30, 1 }
   0xa   : > { %s888_s11 = scalar_select %p178_p1, %s804_s28, %s180_s9  }
   0xb   : > { %p890_p5 = por %p191_p2, %p190_p0  ;;  %p894_p6 = por %p197_p4, %p196_p3 }
   0xc   : > { %p638_p7 = scmp.ge.s32.totalorder %s808_s29, 1  ;;  %p242_p8 = scmp.lt.s32.totalorder %s808_s29, 3 }
   0xe   : > { %p243_p9 = pnand %p638_p7, %p242_p8 }
   0xf   : > { %s900_s14 = sshll.u32 (!%p243_p9), %s634_s6, 4  ;;  %s271_s23 = sand.u32 (!%p243_p9), 1, %s800_s27  }
  0x10   : > { %246 = sbr.rel (%p243_p9) target bundleno = 541 (0x21d), region = 48  ;;  %p274_p10 = scmp.lt.s32.totalorder (!%p243_p9), %s900_s14, 31 }
  0x11   : > { %s272_s24 = scalar_lea.vmem (!%p243_p9), [#allocation3], %s271_s23  ;;  %s578_s10 = scalar_lea.hbm (!%p243_p9), %s1034_s7, %s900_s14 }
  0x12   : > { %s580_s25 = sshll.u32 (!%p243_p9), %s272_s24, 4  ;;  %s568_s15 = scalar_lea.sflag (!%p243_p9), [#allocation4], %s271_s23  ;;  %s581_s25 = int_to_ptr.vmem [resolvable:$true] %s580_s25 }
  0x13   : > { %s748_s16 = scalar_lea.vmem (!%p243_p9), %s581_s25, 16  ;;  %s811_s17 = smov (!%p243_p9), [#allocation3]  }
  0x14   : > { %p749_p11 = scmp.ne.s32.totalorder (!%p243_p9), %s581_s25, %s748_s16  ;;  %s752_s18 = sshll.u32 (!%p243_p9), %s811_s17, 4  ;;  %s753_s18 = int_to_ptr.vmem [resolvable:$false] %s752_s18 }
  0x15   : > { %v744_v0 = vld [vmem:[%s1028_s1] sm:$0xff]   ;;  %vm342_vm0 = vcmask 31744   ;;  %v310_v1 = vld [vmem:[%s1029_s2 + $0x10] sm:$0xff]  ;;  %s275_s19 = scalar_select %p274_p10, %s900_s14, 31  ;;  %v810_v2 = vmov 0   ;;  %v311_v4 = vld [vmem:[%s1029_s2 + $0x18] sm:$0xff] }
  0x16   : > { %682 = vmatprep.mubr.msk.bf16.mxu0 %vm342_vm0, %v744_v0  ;;  %742 = vset.pattern.permute.xlu0 %v810_v2  ;;  %v308_v3 = vld [vmem:[%s1029_s2] sm:$0xff]  ;;  %v309_v5 = vld [vmem:[%s1029_s2 + $0x8] sm:$0xff]  ;;  %v434_v17 = vld [vmem:[%s1031_s4 + $0x10] sm:$0xff]  ;;  %vm466_vm1 = vcmask 261120   ;;  %p750_p12 = pnand %p749_p11, %p890_p5  ;;  %p755_p0 = scmp.lt.s32.totalorder %s581_s25, %s753_s18 }
  0x17   : > { %324 = vperm.xlu0 %742, %v310_v1   ;;  %743 = vset.pattern.permute.xlu1 %v810_v2  ;;  %s640_s22 = sshll.u32 %s275_s19, 3  ;;  %v432_v12 = vld [vmem:[%s1031_s4] sm:$0xff]  ;;  %v433_v14 = vld [vmem:[%s1031_s4 + $0x8] sm:$0xff]  ;;  %v435_v18 = vld [vmem:[%s1031_s4 + $0x18] sm:$0xff]  ;;  %s754_s19 = scalar_lea.vmem %s753_s18, 32 }
  0x18   : > { %314 = vperm.xlu1 %743, %v308_v3   ;;  %s920_s30 = scalar_lea.vmem %s1027_s0, %s640_s22  ;;  %v526_v21 = vld [vmem:[%s1032_s5] sm:$0xff]  ;;  %v527_v22 = vld [vmem:[%s1032_s5 + $0x8] sm:$0xff]  ;;  %v528_v25 = vld [vmem:[%s1032_s5 + $0x10] sm:$0xff]  ;;  %s563_s22 = sld [smem:[#allocation2]] }
  0x19   : > { %v294_v6 = vld [vmem:[%s920_s30 + $0x70] sm:$0xff]  ;;  %v295_v7 = vld [vmem:[%s920_s30 + $0x78] sm:$0xff]  ;;  %v292_v8 = vld [vmem:[%s920_s30 + $0x60] sm:$0xff]  ;;  %p751_p13 = pneg %p750_p12  ;;  %p756_p1 = scmp.lt.s32.totalorder %s754_s19, %s748_s16 }
  0x1a   : > { %v303_v9 = vpack.c.bf16 %v295_v7, %v294_v6  ;;  %v293_v10 = vld [vmem:[%s920_s30 + $0x68] sm:$0xff]  ;;  %v290_v15 = vld [vmem:[%s920_s30 + $0x50] sm:$0xff]  ;;  %v291_v16 = vld [vmem:[%s920_s30 + $0x58] sm:$0xff] }
  0x1b   : > { %329 = vperm.xlu0 %742, %v311_v4   ;;  %v302_v11 = vpack.c.bf16 %v293_v10, %v292_v8  ;;  %v301_v20 = vpack.c.bf16 %v291_v16, %v290_v15  ;;  %v288_v23 = vld [vmem:[%s920_s30 + $0x40] sm:$0xff]  ;;  %v289_v24 = vld [vmem:[%s920_s30 + $0x48] sm:$0xff]  ;;  %v529_v26 = vld [vmem:[%s1032_s5 + $0x18] sm:$0xff]  ;;  %p757_p2 = por %p756_p1, %p755_p0 }
  0x1c   : > { %319 = vperm.xlu1 %743, %v309_v5   ;;  %694 = vmatprep.subr.msk.bf16.mxu0 %vm342_vm0, %v303_v9  ;;  %v371_v13 = vsel %vm342_vm0, %v303_v9, 0  ;;  %v300_v28 = vpack.c.bf16 %v289_v24, %v288_v23  ;;  %v286_v29 = vld [vmem:[%s920_s30 + $0x30] sm:$0xff]  ;;  %v287_v30 = vld [vmem:[%s920_s30 + $0x38] sm:$0xff]  ;;  %v284_v33 = vld [vmem:[%s920_s30 + $0x20] sm:$0xff] }
  0x1d   : > { %667 = vmatpush3.bf16.xpose.msra.mxu0 %v371_v13  ;;  %v368_v19 = vsel %vm342_vm0, %v302_v11, 0  ;;  %v365_v27 = vsel %vm342_vm0, %v301_v20, 0  ;;  %v299_v32 = vpack.c.bf16 %v287_v30, %v286_v29  ;;  %v285_v34 = vld [vmem:[%s920_s30 + $0x28] sm:$0xff]  ;;  %v282_v37 = vld [vmem:[%s920_s30 + $0x10] sm:$0xff]  ;;  %v283_v38 = vld [vmem:[%s920_s30 + $0x18] sm:$0xff]  ;;  %p758_p3 = pnand %p757_p2, %p751_p13 }
  0x1e   : > { %695 = vmatprep.subr.msk.bf16.mxu0 %vm342_vm0, %v302_v11  ;;  %v362_v31 = vsel %vm342_vm0, %v300_v28, 0  ;;  %v298_v36 = vpack.c.bf16 %v285_v34, %v284_v33  ;;  %v297_v40 = vpack.c.bf16 %v283_v38, %v282_v37  ;;  %v280_v41 = vld [vmem:[%s920_s30] sm:$0xff]  ;;  %v281_v42 = vld [vmem:[%s920_s30 + $0x8] sm:$0xff] }
  0x1f   : > { %438 = vperm.xlu0 %742, %v432_v12   ;;  %v359_v35 = vsel %vm342_vm0, %v299_v32, 0  ;;  %v296_v44 = vpack.c.bf16 %v281_v42, %v280_v41  ;;  %v745_v46 = vld [vmem:[%s1028_s1 + $0x8] sm:$0xff]   ;;  %v746_v47 = vld [vmem:[%s1030_s3] sm:$0xff]  }
  0x20   : > { %443 = vperm.xlu1 %743, %v433_v14   ;;  %v356_v39 = vsel %vm342_vm0, %v298_v36, 0  ;;  %v353_v43 = vsel %vm342_vm0, %v297_v40, 0  ;;  %690 = vmatprep.mubr.msk.bf16.mxu1 %vm466_vm1, %v746_v47  ;;  %v747_v2 = vld [vmem:[%s1030_s3 + $0x8] sm:$0xff]  }
  0x21   : > { %v350_v45 = vsel %vm342_vm0, %v296_v44, 0 }
  0x23   : > { %448 = vperm.xlu0 %742, %v434_v17  }
  0x24   : > { %453 = vperm.xlu1 %743, %v435_v18  }
  0x25   : > { %669 = vmatpush3.bf16.xpose.msra.mxu0 %v368_v19 }
  0x26   : > { %696 = vmatprep.subr.msk.bf16.mxu0 %vm342_vm0, %v301_v20 }
  0x27   : > { %532 = vperm.xlu0 %742, %v526_v21  }
  0x28   : > { %537 = vperm.xlu1 %743, %v527_v22  }
  0x2b   : > { %542 = vperm.xlu0 %742, %v528_v25  }
  0x2c   : > { %547 = vperm.xlu1 %743, %v529_v26  }
  0x2d   : > { %671 = vmatpush3.bf16.xpose.msra.mxu0 %v365_v27 }
  0x2e   : > { %697 = vmatprep.subr.msk.bf16.mxu0 %vm342_vm0, %v300_v28 }
  0x35   : > { %673 = vmatpush3.bf16.xpose.msra.mxu0 %v362_v31 }
  0x36   : > { %698 = vmatprep.subr.msk.bf16.mxu0 %vm342_vm0, %v299_v32 }
  0x3d   : > { %675 = vmatpush3.bf16.xpose.msra.mxu0 %v359_v35  ;;  %v564_v35 = vstv %s563_s22 }
  0x3e   : > { %699 = vmatprep.subr.msk.bf16.mxu0 %vm342_vm0, %v298_v36 }
  0x45   : > { %677 = vmatpush3.bf16.xpose.msra.mxu0 %v356_v39 }
  0x46   : > { %700 = vmatprep.subr.msk.bf16.mxu0 %vm342_vm0, %v297_v40 }
  0x4d   : > { %679 = vmatpush3.bf16.xpose.msra.mxu0 %v353_v43 }
  0x4e   : > { %701 = vmatprep.subr.msk.bf16.mxu0 %vm342_vm0, %v296_v44 }
  0x55   : > { %681 = vmatpush3.bf16.xpose.msra.mxu0 %v350_v45 }
  0x5c   : > { %683 = vmatmul.mubr.msk.bf16.vlgmr.msra.gmra.mxu0 %vm342_vm0, %v745_v46 }
  0x92   : > { %v325_v48 = vpop.permute.xlu0 %324 }
  0x93   : > { %v315_v49 = vpop.permute.xlu1 %314 }
  0x96   : > { %v330_v53 = vpop.permute.xlu0 %329 }
  0x97   : > { %v320_v57 = vpop.permute.xlu1 %319 }
  0x9a   : > { %v439_v3 = vpop.permute.xlu0 %438 }
  0x9b   : > { %v444_v4 = vpop.permute.xlu1 %443 }
  0x9e   : > { %v449_v5 = vpop.permute.xlu0 %448 }
  0x9f   : > { %v454_v7 = vpop.permute.xlu1 %453 }
  0xa2   : > { %v533_v12 = vpop.permute.xlu0 %532 }
  0xa3   : > { %v538_v17 = vpop.permute.xlu1 %537 }
  0xa6   : > { %v543_v23 = vpop.permute.xlu0 %542 }
  0xa7   : > { %v548_v26 = vpop.permute.xlu1 %547 }
 0x11c   : > { %v684_v50 = vpop.f32.mrf.mxu0 }
 0x11d   : > { %v416_v52 = vadd.f32 %v684_v50, %v325_v48 }
 0x11e   : > { %v407_v51 = vpop.f32.mrf.mxu0 }
 0x11f   : > { %v408_v55 = vadd.f32 %v407_v51, %v315_v49  ;;  %v424_v59 = vmax.f32 %v416_v52, 0.0 }
 0x120   : > { %v685_v54 = vpop.f32.mrf.mxu0 }
 0x121   : > { %v419_v56 = vadd.f32 %v685_v54, %v330_v53  ;;  %v422_v62 = vmax.f32 %v408_v55, 0.0 }
 0x122   : > { %v410_v58 = vpop.f32.mrf.mxu0 }
 0x123   : > { %v425_v60 = vmax.f32 %v419_v56, 0.0  ;;  %v411_v61 = vadd.f32 %v410_v58, %v320_v57 }
 0x125   : > { %v423_v63 = vmax.f32 %v411_v61, 0.0  ;;  %v431_v0 = vpack.c.bf16 %v425_v60, %v424_v59 }
 0x127   : > { %v430_v1 = vpack.c.bf16 %v423_v63, %v422_v62  ;;  %686 = vmatprep.subr.bf16.mxu1 %v431_v0 }
 0x128   : > { %687 = vmatpush3.bf16.msra.mxu1 %v431_v0 }
 0x129   : > { %688 = vmatprep.subr.bf16.mxu1 %v430_v1 }
 0x12c   : > { %689 = vmatpush3.bf16.msra.mxu1 %v430_v1 }
 0x12f   : > { %691 = vmatmul.mubr.msk.bf16.vlgmr.msra.gmra.mxu1 %vm466_vm1, %v747_v2 }
 0x1ef   : > { %v692_v6 = vpop.f32.mrf.mxu1 }
 0x1f0   : > { %v516_v11 = vadd.f32 %v692_v6, %v449_v5 }
 0x1f1   : > { %v507_v8 = vpop.f32.mrf.mxu1 }
 0x1f2   : > { %v508_v9 = vadd.f32 %v507_v8, %v439_v3  ;;  %v524_v18 = vmax.f32 %v516_v11, 0.0 }
 0x1f3   : > { %v693_v10 = vpop.f32.mrf.mxu1 }
 0x1f4   : > { %v522_v14 = vmax.f32 %v508_v9, 0.0  ;;  %v519_v15 = vadd.f32 %v693_v10, %v454_v7  ;;  %v552_v24 = vmul.f32 %v543_v23, %v524_v18 }
 0x1f5   : > { %v510_v13 = vpop.f32.mrf.mxu1 }
 0x1f6   : > { %v511_v16 = vadd.f32 %v510_v13, %v444_v4  ;;  %v550_v20 = vmul.f32 %v533_v12, %v522_v14  ;;  %v525_v21 = vmax.f32 %v519_v15, 0.0 }
 0x1f8   : > { %v523_v19 = vmax.f32 %v511_v16, 0.0  ;;  %v553_v27 = vmul.f32 %v548_v26, %v525_v21 }
 0x1fa   : > { %v551_v22 = vmul.f32 %v538_v17, %v523_v19 }
 0x1fc   : > { %v554_v25 = vadd.f32 %v551_v22, %v550_v20 }
 0x1fe   : > { %v555_v28 = vadd.f32 %v554_v25, %v552_v24 }
 0x200   : > { %v556_v29 = vadd.f32 %v555_v28, %v553_v27 }
 0x202   : > { %v557_v30 = vrot.slane %v556_v29, 4 }
 0x204   : > { %v558_v31 = vadd.f32 %v557_v30, %v556_v29 }
 0x206   : > { %v559_v32 = vrot.slane %v558_v31, 2 }
 0x208   : > { %v560_v33 = vadd.f32 %v559_v32, %v558_v31 }
 0x20a   : > { %v561_v34 = vrot.slane %v560_v33, 1 }
 0x20c   : > { %v562_v36 = vadd.f32 %v561_v34, %v560_v33 }
 0x20e   : > { %v565_v37 = vadd.f32 %v564_v35, %v562_v36 }
 0x210   : > { %566 = vst [vmem:[%s272_s24] sm:$0x1] %v565_v37 }
 0x211   : > { %761 = shalt.err (!%p758_p3)
}
 0x212   : > { %s762_s20 = scalar_lea.hbm %s578_s10, 16  ;;  %s766_s21 = scalar_lea.hbm %s1034_s7, 32 }
 0x213   : > { %p763_p4 = scmp.ne.s32.totalorder %s578_s10, %s762_s20  ;;  %p767_p9 = scmp.lt.s32.totalorder %s578_s10, %s1034_s7 }
 0x214   : > { %p768_p10 = scmp.lt.s32.totalorder %s766_s21, %s762_s20 }
 0x215   : > { %p764_p7 = pnand %p763_p4, %p890_p5 }
 0x216   : > { %p769_p11 = por %p768_p10, %p767_p9 }
 0x217   : > { %p765_p8 = pneg %p764_p7 }
 0x219   : > { %p770_p12 = pnand %p769_p11, %p765_p8 }
 0x21b   : > { %773 = shalt.err (!%p770_p12)
}
 0x21c   : > { %702 = dma.vmem_to_hbm [thread:$0]  (%p890_p5), %s581_s25, 16, %s578_s10, %s568_s15  }
 0x21d PF: > { %p708_p13 = scmp.ge.s32.totalorder %s808_s29, 2  ;;  %s592_s24 = sand.u32 1, %s796_s26  }
 0x21e   : > { %s593_s6 = scalar_lea.sflag [#allocation4], %s592_s24 }
 0x21f   : > { %p705_p0 = pnand %p708_p13, %p894_p6 }
 0x221   : > { %p706_p1 = pneg %p705_p0 }
 0x223   : > { %791 = dma.done.wait (%p706_p1), %s593_s6, 16  }
 0x224   : > { %793 = vsyncadd (%p706_p1), %s593_s6, 4294967280  ;;  %p18_p2 = scmp.ge.s32.totalorder %s878_s8, 4   ;;  %s1037_s26 = smov %s800_s27 }
 0x225   : > { %s1038_s27 = smov %s804_s28  ;;  %s1039_s28 = smov %s888_s11 }
 0x226   : > { %s1040_s29 = smov %s878_s8  ;;  %20 = sbr.rel (!%p18_p2) target bundleno = 5 (0x5), region = 83 }
 0x22b   :  { %597 = vsyncpa [#allocation4], 1 }
 0x22c   :  { %599 = vsyncpa [#allocation4 + $0x1], 1 }

</bundles_post_ra>
